<compile_context>
chip_gen: v7x
topology: tpu7x:2x2x1
jax: 0.10.0
libtpu: 0.0.40
codegen_flags: <defaults>
</compile_context>

<pallas_src>
import jax
import jax.numpy as jnp
from jax.experimental import pallas as pl
from jax.experimental.pallas import tpu as pltpu


def _round_up(x, m):
    return (x + m - 1) // m * m


def _mlp_encoder_kernel(x_ref, w1_ref, b1_ref, w2_ref, b2_ref, o_ref, acc_ref):
    """One (batch-tile, K-tile) grid step.

    Grid = (batch tiles, K tiles over n_genes). K is a reduction axis: the
    first-layer partial products accumulate into a f32 VMEM scratch, and the
    bias + ReLU + second-linear epilogue runs on the last K step only.
    """
    k = pl.program_id(1)

    @pl.when(k == 0)
    def _init():
        acc_ref[...] = jnp.zeros_like(acc_ref)

    # Partial first-layer matmul on the MXU, f32 accumulation in VMEM scratch.
    acc_ref[...] += jnp.dot(
        x_ref[...], w1_ref[...], preferred_element_type=jnp.float32
    )

    @pl.when(k == pl.num_programs(1) - 1)
    def _finalize():
        h = jnp.maximum(acc_ref[...] + b1_ref[...], 0.0)  # bias + ReLU, f32
        # Dropout(p=0.0) == identity.
        # Cast to the weight dtype only if the caller explicitly chose a lower
        # compute precision (e.g. bf16); accumulation stays f32.
        out = jnp.dot(h.astype(w2_ref.dtype), w2_ref[...],
                      preferred_element_type=jnp.float32)
        o_ref[...] = (out + b2_ref[...]).astype(o_ref.dtype)


def mlp_encoder(x, w1, b1, w2, b2, *, tile_b=256, tile_k=512,
                compute_dtype=None, out_dtype=None):
    """Forward pass of _MLPEncoder: Linear -> ReLU -> Dropout(0) -> Linear.

    x : (B, n_genes);  w1: (n_genes, H);  b1: (1, H);  w2: (H, O);  b2: (1, O)

    tile_b: batch rows per MXU pass (>=128 on v5e, prefer 256/512 on v6e/v7x).
    tile_k: reduction tile over n_genes (bounds W1's VMEM residency).
    compute_dtype: e.g. jnp.bfloat16 to use the native-bf16 MXU on v6e/v7x;
                   accumulation is always f32.  Default: keep input dtype.
    """
    B, G = x.shape
    H = w1.shape[1]
    O = w2.shape[1]
    b1 = b1.reshape(1, -1)
    b2 = b2.reshape(1, -1)
    if out_dtype is None:
        out_dtype = x.dtype
    if compute_dtype is not None:
        x = x.astype(compute_dtype)
        w1 = w1.astype(compute_dtype)
        w2 = w2.astype(compute_dtype)

    # ---- pad to TPU-friendly shapes (lanes multiple of 128, sublanes of 8) ----
    tile_b = max(8, _round_up(min(tile_b, _round_up(B, 8)), 8))
    tile_k = max(128, _round_up(min(tile_k, _round_up(G, 128)), 128))
    Bp = _round_up(B, tile_b)
    Gp = _round_up(G, tile_k)
    Hp = _round_up(H, 128)
    Op = _round_up(O, 128)   # lane-dense output -> unmasked vector stores

    x = jnp.pad(x, ((0, Bp - B), (0, Gp - G)))
    w1 = jnp.pad(w1, ((0, Gp - G), (0, Hp - H)))
    b1 = jnp.pad(b1, ((0, 0), (0, Hp - H)))
    w2 = jnp.pad(w2, ((0, Hp - H), (0, Op - O)))
    b2 = jnp.pad(b2, ((0, 0), (0, Op - O)))

    grid = (Bp // tile_b, Gp // tile_k)   # reduction axis last

    # ---- explicit VMEM budget -------------------------------------------------
    esz = jnp.dtype(x.dtype).itemsize
    vmem_bytes = (
        2 * tile_b * tile_k * esz            # x tiles (double-buffered)
        + 2 * tile_k * Hp * esz              # W1 tiles (double-buffered)
        + Hp * 4 + Hp * Op * esz + Op * 4    # b1, W2, b2 (single-buffered)
        + 2 * tile_b * Op * 4                # out tiles
        + tile_b * Hp * 4                    # f32 accumulator scratch
    )
    vmem_limit = int(min(max(2 * vmem_bytes, 32 * 1024 * 1024), 128 * 1024 * 1024))

    cost = pl.CostEstimate(
        flops=2 * B * G * H + 2 * B * H * O,
        transcendentals=0,
        bytes_accessed=(B * G + G * H + H + H * O + O + B * O) * esz,
    )

    single = pl.Buffered(1)   # resident (constant-index) operands: no double buffer

    out = pl.pallas_call(
        _mlp_encoder_kernel,
        out_shape=jax.ShapeDtypeStruct((Bp, Op), out_dtype),
        grid_spec=pltpu.PrefetchScalarGridSpec(
            num_scalar_prefetch=0,
            grid=grid,
            in_specs=[
                pl.BlockSpec((tile_b, tile_k), lambda i, k: (i, k)),                 # x
                pl.BlockSpec((tile_k, Hp), lambda i, k: (k, 0)),                     # W1
                pl.BlockSpec((1, Hp), lambda i, k: (0, 0), pipeline_mode=single),    # b1
                pl.BlockSpec((Hp, Op), lambda i, k: (0, 0), pipeline_mode=single),   # W2
                pl.BlockSpec((1, Op), lambda i, k: (0, 0), pipeline_mode=single),    # b2
            ],
            out_specs=pl.BlockSpec((tile_b, Op), lambda i, k: (i, 0)),
            scratch_shapes=[pltpu.VMEM((tile_b, Hp), jnp.float32)],
        ),
        compiler_params=pltpu.CompilerParams(
            dimension_semantics=("parallel", "arbitrary"),
            vmem_limit_bytes=vmem_limit,
        ),
        cost_estimate=cost,
    )(x, w1, b1, w2, b2)

    return out[:B, :O]


if __name__ == "__main__":
    # Small shapes consistent with the module (scaled down from n_genes / 1024 / 128
    # defaults), chosen so both grid axes actually step: batch tiles x K tiles = 2 x 2.
    B, G, H, O = 64, 512, 256, 128

    key = jax.random.PRNGKey(0)
    kx, kw1, kb1, kw2, kb2 = jax.random.split(key, 5)

    x = jax.random.normal(kx, (B, G), dtype=jnp.float32)

    lim1 = 1.0 / (G ** 0.5)
    lim2 = 1.0 / (H ** 0.5)
    w1 = jax.random.uniform(kw1, (G, H), jnp.float32, -lim1, lim1)
    b1 = jax.random.uniform(kb1, (1, H), jnp.float32, -lim1, lim1)
    w2 = jax.random.uniform(kw2, (H, O), jnp.float32, -lim2, lim2)
    b2 = jax.random.uniform(kb2, (1, O), jnp.float32, -lim2, lim2)

    # Demo uses small tiles to exercise the batch-parallel and K-reduction axes;
    # production sizes would use the defaults (tile_b=256..512, tile_k=512..1024).
    out = mlp_encoder(x, w1, b1, w2, b2, tile_b=32, tile_k=256)
    out = jax.block_until_ready(out)

    # Cross-check against plain-JAX reference of the same forward pass.
    ref = jnp.maximum(x @ w1 + b1, 0.0) @ w2 + b2
    assert out.shape == (B, O)
    assert jnp.allclose(out, ref, atol=1e-3, rtol=1e-3), float(jnp.max(jnp.abs(out - ref)))

    print("KERNEL_OK")
</pallas_src>

<mosaic_0001>
module attributes {stable_mosaic.version = 11 : i64} {
  func.func @_mlp_encoder_kernel(%arg0: i32, %arg1: i32, %arg2: memref<32x256xf32, #tpu.memory_space<vmem>>, %arg3: memref<256x256xf32, #tpu.memory_space<vmem>>, %arg4: memref<1x256xf32, #tpu.memory_space<vmem>>, %arg5: memref<256x128xf32, #tpu.memory_space<vmem>>, %arg6: memref<1x128xf32, #tpu.memory_space<vmem>>, %arg7: memref<32x128xf32, #tpu.memory_space<vmem>>, %arg8: memref<32x256xf32, #tpu.memory_space<vmem>>) attributes {dimension_semantics = [#tpu.dimension_semantics<parallel>, #tpu.dimension_semantics<arbitrary>], iteration_bounds = array<i64: 2, 2>, scalar_prefetch = 0 : i64, scratch_operands = 1 : i64, tpu.core_type = #tpu.core_type<tc>, window_params = [{transform_indices = @transform_0, window_bounds = array<i64: 32, 256>}, {transform_indices = @transform_1, window_bounds = array<i64: 256, 256>}, {pipeline_mode = #tpu.pipeline_mode<synchronous>, transform_indices = @transform_2, window_bounds = array<i64: 1, 256>}, {pipeline_mode = #tpu.pipeline_mode<synchronous>, transform_indices = @transform_3, window_bounds = array<i64: 256, 128>}, {pipeline_mode = #tpu.pipeline_mode<synchronous>, transform_indices = @transform_4, window_bounds = array<i64: 1, 128>}, {transform_indices = @transform_5, window_bounds = array<i64: 32, 128>}]} {
    %c0_i32 = arith.constant 0 : i32
    %0 = arith.cmpi eq, %arg1, %c0_i32 : i32
    %1 = arith.extui %0 : i1 to i32
    %c0_i32_0 = arith.constant 0 : i32
    %2 = arith.cmpi ne, %1, %c0_i32_0 : i32
    scf.if %2 {
      %cst_9 = arith.constant 0.000000e+00 : f32
      %12 = vector.broadcast %cst_9 : f32 to vector<32x256xf32>
      %c0_10 = arith.constant 0 : index
      %c0_11 = arith.constant 0 : index
      %13 = vector.load %arg8[%c0_10, %c0_11] : memref<32x256xf32, #tpu.memory_space<vmem>>, vector<32x256xf32>
      tpu.vector_store %arg8[%c0_10, %c0_11], %12 {strides = array<i32>} : memref<32x256xf32, #tpu.memory_space<vmem>>, vector<32x256xf32>,
    } else {
    }
    %c0 = arith.constant 0 : index
    %c0_1 = arith.constant 0 : index
    %3 = vector.load %arg8[%c0, %c0_1] : memref<32x256xf32, #tpu.memory_space<vmem>>, vector<32x256xf32>
    %c0_2 = arith.constant 0 : index
    %c0_3 = arith.constant 0 : index
    %4 = vector.load %arg2[%c0_2, %c0_3] : memref<32x256xf32, #tpu.memory_space<vmem>>, vector<32x256xf32>
    %c0_4 = arith.constant 0 : index
    %c0_5 = arith.constant 0 : index
    %5 = vector.load %arg3[%c0_4, %c0_5] : memref<256x256xf32, #tpu.memory_space<vmem>>, vector<256x256xf32>
    %cst = arith.constant dense<0.000000e+00> : vector<32x256xf32>
    %6 = tpu.matmul %4, %5, %cst {dimension_numbers = #tpu.dot_dimension_numbers<[1], [0], [0], [1], [0, 0, 1, 1], [], []>} : vector<32x256xf32>, vector<256x256xf32>, vector<32x256xf32> -> vector<32x256xf32>
    %7 = arith.addf %3, %6 : vector<32x256xf32>
    %c0_6 = arith.constant 0 : index
    %c0_7 = arith.constant 0 : index
    %8 = vector.load %arg8[%c0_6, %c0_7] : memref<32x256xf32, #tpu.memory_space<vmem>>, vector<32x256xf32>
    tpu.vector_store %arg8[%c0_6, %c0_7], %7 {strides = array<i32>} : memref<32x256xf32, #tpu.memory_space<vmem>>, vector<32x256xf32>,
    %c1_i32 = arith.constant 1 : i32
    %9 = arith.cmpi eq, %arg1, %c1_i32 : i32
    %10 = arith.extui %9 : i1 to i32
    %c0_i32_8 = arith.constant 0 : i32
    %11 = arith.cmpi ne, %10, %c0_i32_8 : i32
    scf.if %11 {
      %c0_9 = arith.constant 0 : index
      %c0_10 = arith.constant 0 : index
      %12 = vector.load %arg8[%c0_9, %c0_10] : memref<32x256xf32, #tpu.memory_space<vmem>>, vector<32x256xf32>
      %c0_11 = arith.constant 0 : index
      %c0_12 = arith.constant 0 : index
      %13 = vector.load %arg4[%c0_11, %c0_12] : memref<1x256xf32, #tpu.memory_space<vmem>>, vector<1x256xf32>
      %14 = vector.broadcast %13 : vector<1x256xf32> to vector<32x256xf32>
      %15 = arith.addf %12, %14 : vector<32x256xf32>
      %cst_13 = arith.constant 0.000000e+00 : f32
      %16 = vector.broadcast %cst_13 : f32 to vector<32x256xf32>
      %17 = arith.maximumf %15, %16 : vector<32x256xf32>
      %c0_14 = arith.constant 0 : index
      %c0_15 = arith.constant 0 : index
      %18 = vector.load %arg5[%c0_14, %c0_15] : memref<256x128xf32, #tpu.memory_space<vmem>>, vector<256x128xf32>
      %cst_16 = arith.constant dense<0.000000e+00> : vector<32x128xf32>
      %19 = tpu.matmul %17, %18, %cst_16 {dimension_numbers = #tpu.dot_dimension_numbers<[1], [0], [0], [1], [0, 0, 1, 1], [], []>} : vector<32x256xf32>, vector<256x128xf32>, vector<32x128xf32> -> vector<32x128xf32>
      %c0_17 = arith.constant 0 : index
      %c0_18 = arith.constant 0 : index
      %20 = vector.load %arg6[%c0_17, %c0_18] : memref<1x128xf32, #tpu.memory_space<vmem>>, vector<1x128xf32>
      %21 = vector.broadcast %20 : vector<1x128xf32> to vector<32x128xf32>
      %22 = arith.addf %19, %21 : vector<32x128xf32>
      %c0_19 = arith.constant 0 : index
      %c0_20 = arith.constant 0 : index
      %23 = vector.load %arg7[%c0_19, %c0_20] : memref<32x128xf32, #tpu.memory_space<vmem>>, vector<32x128xf32>
      tpu.vector_store %arg7[%c0_19, %c0_20], %22 {strides = array<i32>} : memref<32x128xf32, #tpu.memory_space<vmem>>, vector<32x128xf32>,
    } else {
    }
    return
  }
  func.func @transform_0(%arg0: i32, %arg1: i32) -> (i32, i32) {
    %c0_i32 = arith.constant 0 : i32
    return %arg0, %arg1 : i32, i32
  }
  func.func @transform_1(%arg0: i32, %arg1: i32) -> (i32, i32) {
    %c0_i32 = arith.constant 0 : i32
    %c0_i32_0 = arith.constant 0 : i32
    return %arg1, %c0_i32 : i32, i32
  }
  func.func @transform_2(%arg0: i32, %arg1: i32) -> (i32, i32) {
    %c0_i32 = arith.constant 0 : i32
    %c0_i32_0 = arith.constant 0 : i32
    %c0_i32_1 = arith.constant 0 : i32
    return %c0_i32, %c0_i32_0 : i32, i32
  }
  func.func @transform_3(%arg0: i32, %arg1: i32) -> (i32, i32) {
    %c0_i32 = arith.constant 0 : i32
    %c0_i32_0 = arith.constant 0 : i32
    %c0_i32_1 = arith.constant 0 : i32
    return %c0_i32, %c0_i32_0 : i32, i32
  }
  func.func @transform_4(%arg0: i32, %arg1: i32) -> (i32, i32) {
    %c0_i32 = arith.constant 0 : i32
    %c0_i32_0 = arith.constant 0 : i32
    %c0_i32_1 = arith.constant 0 : i32
    return %c0_i32, %c0_i32_0 : i32, i32
  }
  func.func @transform_5(%arg0: i32, %arg1: i32) -> (i32, i32) {
    %c0_i32 = arith.constant 0 : i32
    %c0_i32_0 = arith.constant 0 : i32
    return %arg0, %c0_i32 : i32, i32
  }
}

</mosaic_0001>

<bundles_post_ra>
// kernel: tpu_custom_call.1
= control target key start
LH: loop header
LB: loop body
LE: loop exit
PB: predicated region body
PF: predicated region fallthrough
CT: control target
= control target key end

     0   :  { %s1937_s0 = inlined_call_operand.hbm [shape: f32[64,512], index: 0, kind: input, shape index: {}]   ;;  %s1938_s1 = inlined_call_operand.hbm [shape: f32[512,256], index: 1, kind: input, shape index: {}]   ;;  %s1939_s2 = inlined_call_operand.vmem [shape: f32[1,256], index: 2, kind: input, shape index: {}]   ;;  %s1940_s3 = inlined_call_operand.hbm [shape: f32[256,128], index: 3, kind: input, shape index: {}]   ;;  %s1941_s4 = inlined_call_operand.vmem [shape: f32[1,128], index: 4, kind: input, shape index: {}]   ;;  %s1942_s5 = inlined_call_operand.hbm [shape: f32[64,128], index: 5, kind: output, shape index: {}]  }
   0x1   :  { %1963 = sst [smem:[#allocation24_spill]] %s1939_s2 }
   0x2   :  { %1964 = sst [smem:[#allocation25_spill]] %s1940_s3 }
   0x3   :  { %1965 = sst [smem:[#allocation26_spill]] %s1941_s4 }
   0x4   :  { %1966 = sst [smem:[#allocation27_spill]] %s1942_s5 }
   0x5   :  { %10 = vsyncpa [#allocation4], 0 }
   0x6   :  { %12 = vsyncpa [#allocation4 + $0x1], 0 }
   0x7   :  { %13 = vsyncpa [#allocation7], 0 }
   0x8   :  { %15 = vsyncpa [#allocation7 + $0x1], 0 }
   0x9   :  { %16 = vsyncpa [#allocation5], 0 }
   0xa   :  { %18 = vsyncpa [#allocation5 + $0x1], 0  ;;  %s1472_s18 = smov 0   ;;  %s1474_s19 = smov 0  }
   0xb   :  { %s1476_s20 = smov 0   ;;  %s1478_s21 = smov 0  }
   0xc   :  { %s1480_s22 = smov 0   ;;  %s1482_s23 = smov 0  }
   0xd   :  { %s1484_s24 = smov 0   ;;  %s1486_s25 = smov 0  }
   0xe   :  { %s1488_s26 = smov 0   ;;  %s1490_s27 = smov 0  }
   0xf   :  { %s1492_s28 = smov 0   ;;  %s1494_s29 = smov 0  }
  0x10   :  { %s1496_s30 = smov 0   ;;  %s1498_s6 = smov 0  }
  0x11 LB: > { %1967 = sst [smem:[#allocation14_spill]] %s1376_s18  ;;  %s1539_s7 = sadd.s32 4294967295, %s1428_s6   ;;  %s1428_s6 = sphi %s1498_s6, %s24_s6   ;;  %s1424_s30 = sphi %s1496_s30, %s2026_s30   ;;  %s1420_s29 = sphi %s1494_s29, %s2025_s29   ;;  %s1416_s28 = sphi %s1492_s28, %s2024_s28   ;;  %s1412_s27 = sphi %s1490_s27, %s2023_s27   ;;  %s1408_s26 = sphi %s1488_s26, %s2022_s26   ;;  %s1404_s25 = sphi %s1486_s25, %s2021_s25   ;;  %s1400_s24 = sphi %s1484_s24, %s2020_s24   ;;  %s1396_s23 = sphi %s1482_s23, %s2019_s23   ;;  %s1392_s22 = sphi %s1480_s22, %s2018_s22   ;;  %s1388_s21 = sphi %s1478_s21, %s2017_s21   ;;  %s1384_s20 = sphi %s1476_s20, %s2016_s20   ;;  %s1380_s19 = sphi %s1474_s19, %s2015_s19   ;;  %s1376_s18 = sphi %s1472_s18, %s2011_s18  }
  0x12   : > { %1968 = sst [smem:[#allocation15_spill]] %s1380_s19  ;;  %s818_s8 = sadd.s32 4294967294, %s1428_s6  }
  0x13   : > { %1969 = sst [smem:[#allocation16_spill]] %s1412_s27  ;;  %p58_p0 = scmp.ne.s32.totalorder %s1404_s25, %s1400_s24 }
  0x14   : > { %1970 = sst [smem:[#allocation17_spill]] %s1416_s28  ;;  %p1946_p1 = scmp.eq.s32.totalorder %s1539_s7, 0 }
  0x15   : > { %1971 = sst [smem:[#allocation18_spill]] %s1539_s7  ;;  %p84_p2 = scmp.ne.s32.totalorder %s1392_s22, %s1388_s21 }
  0x16   : > { %p1548_p3 = por %p1946_p1, %p58_p0  ;;  %p170_p4 = scmp.ne.s32.totalorder %s1384_s20, %s1380_s19 }
  0x17   : > { %p1556_p5 = por %p84_p2, %p1946_p1  ;;  %p171_p6 = scmp.eq.s32.totalorder %s1539_s7, 3 }
  0x18   : > { %s1972_s10 = scalar_select %p1548_p3, 1, 0 }
  0x19   : > { %s1973_s11 = scalar_select %p1556_p5, 1, 0 }
  0x1a   : > { %p176_p7 = scmp.ne.s32.totalorder %s1380_s19, %s1376_s18  ;;  %p177_p8 = scmp.eq.s32.totalorder %s818_s8, 3 }
  0x1b   : > { %1974 = sst [smem:[#allocation19_spill]] %s1973_s11  ;;  %p1563_p9 = por %p171_p6, %p170_p4 }
  0x1c   : > { %p819_p10 = scmp.ge.s32.totalorder %s1428_s6, 1  ;;  %p1568_p11 = por %p177_p8, %p176_p7 }
  0x1d   : > { %s1975_s12 = scalar_select %p1563_p9, 1, 0 }
  0x1e   : > { %s1977_s13 = scalar_select %p1568_p11, 1, 0 }
  0x1f   : > { %1976 = sst [smem:[#allocation20_spill]] %s1975_s12  ;;  %p184_p12 = scmp.lt.s32.totalorder %s1428_s6, 5 }
  0x20   : > { %1978 = sst [smem:[#allocation21_spill]] %s1977_s13  ;;  %s1430_s15 = smov [#allocation8]  }
  0x21   : > { %p1573_p13 = pnand %p819_p10, %p184_p12  ;;  %s199_s16 = sshll.u32 %s1430_s15, 4  ;;  %s200_s16 = int_to_ptr.vmem [resolvable:$true] %s199_s16 }
  0x22   : > { %s1981_s3 = sld [smem:[#allocation25_spill]] }
  0x23   : > { %s1979_s14 = scalar_select %p1573_p13, 1, 0 }
  0x24   : > { %p1046_p0 = pneg %p1573_p13 }
  0x26   : > { %p1581_p2 = pnand %p1046_p0, %p1946_p1 }
  0x28   : > { %s1186_s8 = scalar_lea.hbm %s1981_s3, 4096  ;;  %p1188_p6 = pneg %p1581_p2 }
  0x29   : > { %p1187_p4 = scmp.ne.s32.totalorder %s1981_s3, %s1186_s8  ;;  %p1193_p10 = scmp.lt.u32.totalorder %s1186_s8, %s1981_s3 }
  0x2b   : > { %p1189_p7 = pnand %p1188_p6, %p1187_p4 }
  0x2d   : > { %p1190_p8 = pneg %p1189_p7 }
  0x2f   : > { %p1195_p12 = pnand %p1193_p10, %p1190_p8 }
  0x31   : > { %1198 = shalt.err (!%p1195_p12)
}
  0x32   : > { %s1199_s5 = scalar_lea.vmem %s200_s16, 4096  ;;  %p1207_p9 = scmp.lt.s32.totalorder %s200_s16, %s200_s16 }
  0x33   : > { %p1200_p0 = scmp.ne.s32.totalorder %s200_s16, %s1199_s5  ;;  %p1208_p5 = scmp.lt.s32.totalorder %s1199_s5, %s1199_s5 }
  0x35   : > { %p1202_p1 = pnand %p1200_p0, %p1188_p6  ;;  %p1209_p3 = por %p1208_p5, %p1207_p9 }
  0x37   : > { %p1203_p11 = pneg %p1202_p1 }
  0x39   : > { %p1210_p13 = pnand %p1209_p3, %p1203_p11 }
  0x3b   : > { %1213 = shalt.err (!%p1210_p13)
}
  0x3c   : > { %s1431_s9 = smov 128   ;;  %s1432_s18 = smov 8  }
  0x3d   : > { %1049 = dma.hbm_to_vmem [thread:$0]  (!%p1581_p2), %s1981_s3, 4096, %s200_s16, [#allocation7], %s1431_s9, %s1431_s9, %s1432_s18  }
  0x3e   : > { %s33_s5 = sadd.s32 1, %s1420_s29  ;;  %s36_s24 = sadd.s32 1, %s1424_s30 }
  0x3f   : > { %p34_p1 = scmp.ge.s32.totalorder %s33_s5, 2  ;;  %s45_s8 = sadd.s32 1, %s1408_s26 }
  0x40   : > { %p52_p3 = scmp.ne.s32.totalorder %s1408_s26, %s1404_s25  ;;  %p1962_p5 = scmp.eq.s32.totalorder %s1428_s6, 0 }
  0x41   : > { %s2028_s5 = smov (%p34_p1, %s33_s5), 0  ;;  %s2030_s24 = smov (!%p34_p1, %s36_s24), %s1424_s30 }
  0x42   : > { %1982 = sst [smem:[#allocation22_spill]] %s2028_s5  ;;  %s1611_s17 = ssub.s32 %s1420_s29, %s2028_s5 }
  0x43   : > { %p38_p9 = scmp.ge.s32.totalorder %s2030_s24, 2  ;;  %p69_p11 = scmp.eq.s32.totalorder %s1611_s17, 0 }
  0x44   : > { %p1617_p13 = por %p1962_p5, %p52_p3  ;;  %p1961_p2 = scmp.lt.s32.totalorder %s1428_s6, 4 }
  0x45   : > { %s2032_s24 = smov (%p38_p9, %s2030_s24), 0  ;;  %s216_s15 = sand.u32 1, %s1408_s26  }
  0x46   : > { %1984 = sst [smem:[#allocation23_spill]] %s2032_s24  ;;  %s824_s9 = sshll.u32 %s1420_s29, 1 }
  0x47   : > { %s40_s18 = ssub.s32 %s1424_s30, %s2032_s24  ;;  %s822_s21 = sshll.u32 %s216_s15, 6 }
  0x48   : > { %s42_s13 = sor.u32 %s1611_s17, %s40_s18  ;;  %p158_p4 = scmp.eq.s32.totalorder %s40_s18, 0 }
  0x49   : > { %p43_p6 = scmp.eq.s32.totalorder %s42_s13, 0  ;;  %s1985_s3 = sadd.s32 1, %s1384_s20 }
  0x4a   : > { %s1632_s5 = scalar_select %p158_p4, %s1384_s20, %s1985_s3  }
  0x4b   : > { %s1635_s12 = scalar_select %p43_p6, %s1408_s26, %s45_s8  }
  0x4c   : > { %s844_s28 = sshll.u32 %s1424_s30, 4  ;;  %s220_s2 = scalar_lea.vmem [#allocation3], %s822_s21 }
  0x4d   : > { %s227_s4 = sadd.s32 %s844_s28, %s824_s9  ;;  %s230_s27 = sshll.u32 %s220_s2, 4  ;;  %s1638_s27 = int_to_ptr.vmem [resolvable:$true] %s230_s27 }
  0x4e   : > { %s826_s19 = sshll.u32 %s227_s4, 7  ;;  %p1649_p7 = pnand %p1961_p2, %p1617_p13 }
  0x4f   : > { %s1643_s24 = scalar_lea.hbm %s1937_s0, %s826_s19  ;;  %s1653_s2 = scalar_lea.sflag [#allocation4], %s216_s15 }
  0x50   : > { %s1214_s4 = scalar_lea.hbm %s1643_s24, 1024  ;;  %p1216_p10 = pneg %p1649_p7 }
  0x51   : > { %p1215_p8 = scmp.ne.s32.totalorder %s1643_s24, %s1214_s4  ;;  %s1219_s7 = scalar_lea.hbm %s1937_s0, 4096 }
  0x52   : > { %p1220_p1 = scmp.lt.u32.totalorder %s1643_s24, %s1937_s0  ;;  %p1221_p3 = scmp.lt.u32.totalorder %s1219_s7, %s1214_s4 }
  0x53   : > { %p1217_p12 = pnand %p1216_p10, %p1215_p8  ;;  %p1223_p13 = scmp.lt.u32.totalorder %s1214_s4, %s1643_s24 }
  0x54   : > { %p1222_p9 = por %p1221_p3, %p1220_p1 }
  0x55   : > { %p1218_p0 = pneg %p1217_p12 }
  0x56   : > { %p1224_p4 = por %p1223_p13, %p1222_p9 }
  0x58   : > { %p1225_p6 = pnand %p1224_p4, %p1218_p0 }
  0x5a   : > { %1228 = shalt.err (!%p1225_p6)
}
  0x5b   : > { %s1229_s16 = scalar_lea.vmem %s1638_s27, 1024  ;;  %s1433_s15 = smov [#allocation3]  }
  0x5c   : > { %p1230_p8 = scmp.ne.s32.totalorder %s1638_s27, %s1229_s16  ;;  %s1234_s9 = sshll.u32 %s1433_s15, 4  ;;  %s1235_s9 = int_to_ptr.vmem [resolvable:$false] %s1234_s9 }
  0x5d   : > { %s1236_s18 = scalar_lea.vmem %s1235_s9, 2048  ;;  %p1237_p5 = scmp.lt.s32.totalorder %s1638_s27, %s1235_s9 }
  0x5e   : > { %p1232_p12 = pnand %p1230_p8, %p1216_p10  ;;  %p1238_p1 = scmp.lt.s32.totalorder %s1236_s18, %s1229_s16 }
  0x60   : > { %p1233_p2 = pneg %p1232_p12  ;;  %p1239_p3 = por %p1238_p1, %p1237_p5 }
  0x62   : > { %p1240_p9 = pnand %p1239_p3, %p1233_p2 }
  0x64   : > { %1243 = shalt.err (!%p1240_p9)
}
  0x65   : > { %s1434_s13 = smov 512   ;;  %s1435_s21 = smov 256  }
  0x66   : > { %s1436_s4 = smov 16   ;;  %s240_s19 = sand.u32 1, %s1428_s6  }
  0x67   : > { %1053 = dma.hbm_to_vmem [thread:$0]  (!%p1649_p7), %s1643_s24, 1024, %s1638_s27, %s1653_s2, %s1434_s13, %s1435_s21, %s1436_s4  }
  0x68   : > { %s71_s28 = sadd.s32 1, %s1396_s23  ;;  %p78_p5 = scmp.ne.s32.totalorder %s1396_s23, %s1392_s22 }
  0x69   : > { %s1690_s7 = scalar_select %p69_p11, %s1396_s23, %s71_s28  }
  0x6a   : > { %p1987_p2 = scmp.eq.s32.totalorder %s1428_s6, 0  ;;  %s242_s11 = sand.u32 1, %s1396_s23  }
  0x6b   : > { %s827_s8 = sshll.u32 %s242_s11, 9  ;;  %s846_s16 = sshll.u32 %s1420_s29, 13 }
  0x6c   : > { %p80_p10 = por %p78_p5, %p1987_p2  ;;  %s1699_s18 = scalar_lea.hbm %s1938_s1, %s846_s16 }
  0x6d   : > { %s244_s27 = scalar_lea.vmem [#allocation6], %s827_s8  ;;  %p1988_p7 = scmp.lt.s32.totalorder %s1428_s6, 4 }
  0x6e   : > { %s252_s24 = sshll.u32 %s244_s27, 4  ;;  %s1709_s3 = scalar_lea.sflag [#allocation7], %s240_s19  ;;  %s1707_s24 = int_to_ptr.vmem [resolvable:$true] %s252_s24 }
  0x6f   : > { %p1703_p0 = pnand %p1988_p7, %p80_p10  ;;  %s1244_s2 = scalar_lea.hbm %s1699_s18, 8192 }
  0x70   : > { %p1245_p11 = scmp.ne.s32.totalorder %s1699_s18, %s1244_s2  ;;  %s1249_s11 = scalar_lea.hbm %s1938_s1, 16384 }
  0x71   : > { %p1246_p13 = pneg %p1703_p0  ;;  %p1250_p8 = scmp.lt.u32.totalorder %s1699_s18, %s1938_s1 }
  0x72   : > { %p1251_p12 = scmp.lt.u32.totalorder %s1249_s11, %s1244_s2  ;;  %p1253_p3 = scmp.lt.u32.totalorder %s1244_s2, %s1699_s18 }
  0x73   : > { %p1247_p4 = pnand %p1246_p13, %p1245_p11 }
  0x74   : > { %p1252_p1 = por %p1251_p12, %p1250_p8 }
  0x75   : > { %p1248_p6 = pneg %p1247_p4 }
  0x76   : > { %p1254_p9 = por %p1253_p3, %p1252_p1 }
  0x78   : > { %p1255_p5 = pnand %p1254_p9, %p1248_p6 }
  0x7a   : > { %1258 = shalt.err (!%p1255_p5)
}
  0x7b   : > { %s1259_s19 = scalar_lea.vmem %s1707_s24, 8192  ;;  %s1437_s15 = smov [#allocation6]  }
  0x7c   : > { %p1260_p2 = scmp.ne.s32.totalorder %s1707_s24, %s1259_s19  ;;  %s1264_s9 = sshll.u32 %s1437_s15, 4  ;;  %s1265_s9 = int_to_ptr.vmem [resolvable:$false] %s1264_s9 }
  0x7d   : > { %s1266_s27 = scalar_lea.vmem %s1265_s9, 16384  ;;  %p1267_p11 = scmp.lt.s32.totalorder %s1707_s24, %s1265_s9 }
  0x7e   : > { %p1262_p10 = pnand %p1260_p2, %p1246_p13  ;;  %p1268_p4 = scmp.lt.s32.totalorder %s1266_s27, %s1259_s19 }
  0x80   : > { %p1263_p7 = pneg %p1262_p10  ;;  %p1269_p8 = por %p1268_p4, %p1267_p11 }
  0x82   : > { %p1270_p12 = pnand %p1269_p8, %p1263_p7 }
  0x84   : > { %1273 = shalt.err (!%p1270_p12)
}
  0x85   : > { %1056 = dma.hbm_to_vmem [thread:$0]  (!%p1703_p0), %s1699_s18, 8192, %s1707_s24, %s1709_s3, %s1435_s21, %s1435_s21, %s1436_s4  }
  0x86   : > { %p1990_p13 = scmp.ne.s32.totalorder %s1979_s14, 0 }
  0x87   : > { %s266_s2 = sand.u32 (!%p1990_p13), 1, %s1404_s25   ;;  %p1991_p6 = scmp.ne.s32.totalorder (!%p1990_p13), %s1972_s10, 0 }
  0x88   : > { %264 = sbr.rel (%p1990_p13) target bundleno = 717 (0x2cd), region = 40  ;;  %s832_s13 = sshll.u32 (!%p1990_p13), %s266_s2, 6 }
  0x89   : > { %s267_s28 = scalar_lea.sflag (!%p1990_p13), [#allocation4], %s266_s2  ;;  %s1743_s11 = scalar_lea.vmem (!%p1990_p13), [#allocation3], %s832_s13 }
  0x8f   : > { %1359 = dma.done.wait (%p1991_p6), %s267_s28, 1024  }
  0x90   : > { %1361 = vsyncadd (%p1991_p6), %s267_s28, 4294966272  ;;  %s1992_s17 = sld [smem:[#allocation18_spill]]  ;;  %s1993_s8 = sld [smem:[#allocation19_spill]] }
  0x91   : > { %s277_s21 = sand.u32 1, %s1392_s22  }
  0x92   : > { %s833_s4 = sshll.u32 %s277_s21, 9 }
  0x93   : > { %s1751_s18 = scalar_lea.vmem [#allocation6], %s833_s4 }
  0x96   : > { %s275_s16 = sand.u32 1, %s1992_s17   ;;  %p1994_p0 = scmp.ne.s32.totalorder %s1993_s8, 0 }
  0x97   : > { %s276_s14 = scalar_lea.sflag [#allocation7], %s275_s16 }
  0x98   : > { %1363 = dma.done.wait (%p1994_p0), %s276_s14, 8192  }
  0x99   : > { %1365 = vsyncadd (%p1994_p0), %s276_s14, 4294959104  ;;  %p1995_p1 = scmp.eq.s32.totalorder %s1992_s17, 0 }
  0x9b   : > { %1367 = dma.done.wait (%p1995_p1), [#allocation7], 4096   ;;  %p1996_p3 = pmov %p1995_p1 }
  0x9c   : > { %s1997_s10 = sld [smem:[#allocation15_spill]]  ;;  %s1998_s15 = sld [smem:[#allocation16_spill]] }
  0x9d   : > { %1369 = vsyncadd (%p1996_p3), [#allocation7], 4294963200 }
  0xa2   : > { %s312_s24 = sand.u32 1, %s1997_s10   ;;  %p836_p9 = scmp.ne.s32.totalorder %s1998_s15, 0 }
  0xa3   : > { %s835_s3 = sshll.u32 %s312_s24, 5  ;;  %v1438_v0 = vmov (!%p836_p9), 0.0  }
  0xa4   : > { %s1764_s19 = scalar_lea.vmem [#allocation9], %s835_s3  ;;  %322 = sbr.rel (%p836_p9) target bundleno = 171 (0xab), region = 56  ;;  %323 = vst [vmem:[#allocation2] sm:$0xff] (!%p836_p9), %v1438_v0  ;;  %324 = vst [vmem:[#allocation2 + $0x8] sm:$0xff] (!%p836_p9), %v1438_v0 }
  0xa5   : > { %325 = vst [vmem:[#allocation2 + $0x10] sm:$0xff] (!%p836_p9), %v1438_v0  ;;  %326 = vst [vmem:[#allocation2 + $0x18] sm:$0xff] (!%p836_p9), %v1438_v0 }
  0xa6   : > { %327 = vst [vmem:[#allocation2 + $0x20] sm:$0xff] (!%p836_p9), %v1438_v0  ;;  %328 = vst [vmem:[#allocation2 + $0x28] sm:$0xff] (!%p836_p9), %v1438_v0 }
  0xa7   : > { %329 = vst [vmem:[#allocation2 + $0x30] sm:$0xff] (!%p836_p9), %v1438_v0  ;;  %330 = vst [vmem:[#allocation2 + $0x38] sm:$0xff] (!%p836_p9), %v1438_v0 }
  0xab PF: > { %v348_v1 = vld [vmem:[%s1751_s18 + $0x8] sm:$0xff]  ;;  %v350_v2 = vld [vmem:[%s1751_s18 + $0x18] sm:$0xff]  ;;  %v347_v3 = vld [vmem:[%s1751_s18] sm:$0xff]  ;;  %s1999_s9 = sld [smem:[#allocation16_spill]] }
  0xac   : > { %v892_v4 = vpack.c.bf16 %v350_v2, %v348_v1  ;;  %v349_v5 = vld [vmem:[%s1751_s18 + $0x10] sm:$0xff]  ;;  %v352_v6 = vld [vmem:[%s1751_s18 + $0x28] sm:$0xff]  ;;  %v354_v7 = vld [vmem:[%s1751_s18 + $0x38] sm:$0xff] }
  0xad   : > { %v894_v8 = vpack.c.bf16 %v349_v5, %v347_v3  ;;  %v896_v9 = vpack.c.bf16 %v354_v7, %v352_v6  ;;  %v351_v10 = vld [vmem:[%s1751_s18 + $0x20] sm:$0xff]  ;;  %v353_v11 = vld [vmem:[%s1751_s18 + $0x30] sm:$0xff]  ;;  %v356_v12 = vld [vmem:[%s1751_s18 + $0x48] sm:$0xff] }
  0xae   : > { %893 = vmatprep.subr.bf16.mxu0 %v892_v4  ;;  %988 = vmatprep.subr.bf16.mxu1 %v892_v4  ;;  %v358_v13 = vld [vmem:[%s1751_s18 + $0x58] sm:$0xff]  ;;  %v898_v14 = vpack.c.bf16 %v353_v11, %v351_v10  ;;  %v355_v16 = vld [vmem:[%s1751_s18 + $0x40] sm:$0xff]  ;;  %v357_v17 = vld [vmem:[%s1751_s18 + $0x50] sm:$0xff] }
  0xaf   : > { %895 = vmatpush1.bf16.msra.mxu0 %v894_v8  ;;  %1004 = vmatpush1.bf16.msra.mxu1 %v894_v8  ;;  %v900_v15 = vpack.c.bf16 %v358_v13, %v356_v12  ;;  %v360_v18 = vld [vmem:[%s1751_s18 + $0x68] sm:$0xff]  ;;  %v362_v19 = vld [vmem:[%s1751_s18 + $0x78] sm:$0xff]  ;;  %v902_v20 = vpack.c.bf16 %v357_v17, %v355_v16  ;;  %v359_v22 = vld [vmem:[%s1751_s18 + $0x60] sm:$0xff] }
  0xb0   : > { %897 = vmatprep.subr.bf16.mxu0 %v896_v9  ;;  %989 = vmatprep.subr.bf16.mxu1 %v896_v9  ;;  %v904_v21 = vpack.c.bf16 %v362_v19, %v360_v18  ;;  %v361_v23 = vld [vmem:[%s1751_s18 + $0x70] sm:$0xff]  ;;  %v364_v24 = vld [vmem:[%s1751_s18 + $0x88] sm:$0xff]  ;;  %v366_v25 = vld [vmem:[%s1751_s18 + $0x98] sm:$0xff] }
  0xb1   : > { %v906_v26 = vpack.c.bf16 %v361_v23, %v359_v22  ;;  %v908_v27 = vpack.c.bf16 %v366_v25, %v364_v24  ;;  %v363_v28 = vld [vmem:[%s1751_s18 + $0x80] sm:$0xff]  ;;  %v365_v29 = vld [vmem:[%s1751_s18 + $0x90] sm:$0xff]  ;;  %v368_v30 = vld [vmem:[%s1751_s18 + $0xa8] sm:$0xff]  ;;  %p837_p5 = scmp.ne.s32.totalorder %s1999_s9, 1 }
  0xb2   : > { %v370_v31 = vld [vmem:[%s1751_s18 + $0xb8] sm:$0xff]  ;;  %v910_v32 = vpack.c.bf16 %v365_v29, %v363_v28  ;;  %v367_v34 = vld [vmem:[%s1751_s18 + $0xa0] sm:$0xff]  ;;  %v369_v35 = vld [vmem:[%s1751_s18 + $0xb0] sm:$0xff]  ;;  %s2000_s13 = sld [smem:[#allocation24_spill]] (!%p837_p5)  ;;  %s2001_s17 = sld [smem:[#allocation26_spill]] (!%p837_p5) }
  0xb3   : > { %899 = vmatpush1.bf16.msra.mxu0 %v898_v14  ;;  %1005 = vmatpush1.bf16.msra.mxu1 %v898_v14  ;;  %v912_v33 = vpack.c.bf16 %v370_v31, %v368_v30  ;;  %v372_v36 = vld [vmem:[%s1751_s18 + $0xc8] sm:$0xff]  ;;  %v374_v37 = vld [vmem:[%s1751_s18 + $0xd8] sm:$0xff]  ;;  %v914_v38 = vpack.c.bf16 %v369_v35, %v367_v34  ;;  %v371_v39 = vld [vmem:[%s1751_s18 + $0xc0] sm:$0xff] }
  0xb4   : > { %901 = vmatprep.subr.bf16.mxu0 %v900_v15  ;;  %990 = vmatprep.subr.bf16.mxu1 %v900_v15  ;;  %v916_v40 = vpack.c.bf16 %v374_v37, %v372_v36  ;;  %v373_v41 = vld [vmem:[%s1751_s18 + $0xd0] sm:$0xff]  ;;  %v340_v42 = vld [vmem:[%s1743_s11 + $0x8] sm:$0xff]  ;;  %v378_v45 = vld [vmem:[%s1751_s18 + $0xf8] sm:$0xff] }
  0xb5   : > { %v344_v43 = vld [vmem:[%s1743_s11 + $0x28] sm:$0xff]  ;;  %475 = vmatprep.mubr.f32.mxu0 %v340_v42  ;;  %v918_v46 = vpack.c.bf16 %v373_v41, %v371_v39  ;;  %v375_v48 = vld [vmem:[%s1751_s18 + $0xe0] sm:$0xff]  ;;  %v377_v49 = vld [vmem:[%s1751_s18 + $0xf0] sm:$0xff] }
  0xb6   : > { %v376_v44 = vld [vmem:[%s1751_s18 + $0xe8] sm:$0xff]  ;;  %487 = vmatprep.mubr.f32.mxu1 %v344_v43  ;;  %v382_v51 = vld [vmem:[%s1751_s18 + $0x118] sm:$0xff]  ;;  %v922_v52 = vpack.c.bf16 %v377_v49, %v375_v48  ;;  %v379_v54 = vld [vmem:[%s1751_s18 + $0x100] sm:$0xff] }
  0xb7   : > { %903 = vmatpush1.bf16.msra.mxu0 %v902_v20  ;;  %1006 = vmatpush1.bf16.msra.mxu1 %v902_v20  ;;  %v920_v47 = vpack.c.bf16 %v378_v45, %v376_v44  ;;  %v380_v50 = vld [vmem:[%s1751_s18 + $0x108] sm:$0xff]  ;;  %v381_v55 = vld [vmem:[%s1751_s18 + $0x110] sm:$0xff]  ;;  %v386_v57 = vld [vmem:[%s1751_s18 + $0x138] sm:$0xff] }
  0xb8   : > { %905 = vmatprep.subr.bf16.mxu0 %v904_v21  ;;  %991 = vmatprep.subr.bf16.mxu1 %v904_v21  ;;  %v924_v53 = vpack.c.bf16 %v382_v51, %v380_v50  ;;  %v384_v56 = vld [vmem:[%s1751_s18 + $0x128] sm:$0xff]  ;;  %v926_v58 = vpack.c.bf16 %v381_v55, %v379_v54  ;;  %v383_v60 = vld [vmem:[%s1751_s18 + $0x120] sm:$0xff]  ;;  %v385_v61 = vld [vmem:[%s1751_s18 + $0x130] sm:$0xff] }
  0xb9   : > { %v928_v59 = vpack.c.bf16 %v386_v57, %v384_v56  ;;  %v388_v62 = vld [vmem:[%s1751_s18 + $0x148] sm:$0xff]  ;;  %v390_v63 = vld [vmem:[%s1751_s18 + $0x158] sm:$0xff]  ;;  %v930_v0 = vpack.c.bf16 %v385_v61, %v383_v60  ;;  %v387_v2 = vld [vmem:[%s1751_s18 + $0x140] sm:$0xff] }
  0xba   : > { %v932_v1 = vpack.c.bf16 %v390_v63, %v388_v62  ;;  %v389_v3 = vld [vmem:[%s1751_s18 + $0x150] sm:$0xff]  ;;  %v392_v4 = vld [vmem:[%s1751_s18 + $0x168] sm:$0xff]  ;;  %v394_v5 = vld [vmem:[%s1751_s18 + $0x178] sm:$0xff] }
  0xbb   : > { %907 = vmatpush1.bf16.msra.mxu0 %v906_v26  ;;  %1007 = vmatpush1.bf16.msra.mxu1 %v906_v26  ;;  %v934_v6 = vpack.c.bf16 %v389_v3, %v387_v2  ;;  %v936_v7 = vpack.c.bf16 %v394_v5, %v392_v4  ;;  %v391_v8 = vld [vmem:[%s1751_s18 + $0x160] sm:$0xff]  ;;  %v393_v9 = vld [vmem:[%s1751_s18 + $0x170] sm:$0xff]  ;;  %v396_v10 = vld [vmem:[%s1751_s18 + $0x188] sm:$0xff]  ;;  %v530_v4 = vlaneseq (!%p837_p5) }
  0xbc   : > { %909 = vmatprep.subr.bf16.mxu0 %v908_v27  ;;  %992 = vmatprep.subr.bf16.mxu1 %v908_v27  ;;  %v398_v11 = vld [vmem:[%s1751_s18 + $0x198] sm:$0xff]  ;;  %v938_v12 = vpack.c.bf16 %v393_v9, %v391_v8  ;;  %v395_v14 = vld [vmem:[%s1751_s18 + $0x180] sm:$0xff]  ;;  %v397_v15 = vld [vmem:[%s1751_s18 + $0x190] sm:$0xff] }
  0xbd   : > { %v940_v13 = vpack.c.bf16 %v398_v11, %v396_v10  ;;  %v400_v16 = vld [vmem:[%s1751_s18 + $0x1a8] sm:$0xff]  ;;  %v402_v17 = vld [vmem:[%s1751_s18 + $0x1b8] sm:$0xff]  ;;  %v942_v18 = vpack.c.bf16 %v397_v15, %v395_v14  ;;  %v399_v20 = vld [vmem:[%s1751_s18 + $0x1a0] sm:$0xff] }
  0xbe   : > { %v944_v19 = vpack.c.bf16 %v402_v17, %v400_v16  ;;  %v401_v21 = vld [vmem:[%s1751_s18 + $0x1b0] sm:$0xff]  ;;  %v404_v22 = vld [vmem:[%s1751_s18 + $0x1c8] sm:$0xff]  ;;  %v406_v23 = vld [vmem:[%s1751_s18 + $0x1d8] sm:$0xff]  ;;  %v531_v16 = vshrl.u32 (!%p837_p5), %v530_v4, 7 }
  0xbf   : > { %911 = vmatpush1.bf16.msra.mxu0 %v910_v32  ;;  %1008 = vmatpush1.bf16.msra.mxu1 %v910_v32  ;;  %v946_v24 = vpack.c.bf16 %v401_v21, %v399_v20  ;;  %v948_v25 = vpack.c.bf16 %v406_v23, %v404_v22  ;;  %v403_v26 = vld [vmem:[%s1751_s18 + $0x1c0] sm:$0xff]  ;;  %v405_v27 = vld [vmem:[%s1751_s18 + $0x1d0] sm:$0xff]  ;;  %v408_v28 = vld [vmem:[%s1751_s18 + $0x1e8] sm:$0xff] }
  0xc0   : > { %913 = vmatprep.subr.bf16.mxu0 %v912_v33  ;;  %993 = vmatprep.subr.bf16.mxu1 %v912_v33  ;;  %v410_v29 = vld [vmem:[%s1751_s18 + $0x1f8] sm:$0xff]  ;;  %v950_v30 = vpack.c.bf16 %v405_v27, %v403_v26  ;;  %v407_v32 = vld [vmem:[%s1751_s18 + $0x1e0] sm:$0xff]  ;;  %v409_v33 = vld [vmem:[%s1751_s18 + $0x1f0] sm:$0xff]  ;;  %v536_v23 = vsub.s32 (!%p837_p5), 1, %v531_v16 }
  0xc1   : > { %v952_v31 = vpack.c.bf16 %v410_v29, %v408_v28  ;;  %v954_v34 = vpack.c.bf16 %v409_v33, %v407_v32  ;;  %v339_v35 = vld [vmem:[%s1743_s11] sm:$0xff]  ;;  %v342_v37 = vld [vmem:[%s1743_s11 + $0x18] sm:$0xff]  ;;  %v341_v39 = vld [vmem:[%s1743_s11 + $0x10] sm:$0xff] }
  0xc2   : > { %v343_v36 = vld [vmem:[%s1743_s11 + $0x20] sm:$0xff]  ;;  %v332_v43 = vld [vmem:[#allocation2 + $0x8] sm:$0xff]  ;;  %v337_v54 = vld [vmem:[#allocation2 + $0x30] sm:$0xff] }
  0xc3   : > { %915 = vmatpush1.bf16.msra.mxu0 %v914_v38  ;;  %1009 = vmatpush1.bf16.msra.mxu1 %v914_v38  ;;  %v346_v38 = vld [vmem:[%s1743_s11 + $0x38] sm:$0xff]  ;;  %v331_v41 = vld [vmem:[#allocation2] sm:$0xff]  ;;  %v336_v44 = vld [vmem:[#allocation2 + $0x28] sm:$0xff] }
  0xc4   : > { %917 = vmatprep.subr.bf16.mxu0 %v916_v40  ;;  %994 = vmatprep.subr.bf16.mxu1 %v916_v40  ;;  %v345_v40 = vld [vmem:[%s1743_s11 + $0x30] sm:$0xff]  ;;  %v335_v42 = vld [vmem:[#allocation2 + $0x20] sm:$0xff]  ;;  %v334_v55 = vld [vmem:[#allocation2 + $0x18] sm:$0xff] }
  0xc5   : > { %v338_v56 = vld [vmem:[#allocation2 + $0x38] sm:$0xff]  ;;  %v573_v2 = vld [vmem:[#allocation8 + $0x88] sm:$0xff] (!%p837_p5)  ;;  %v556_v3 = vld [vmem:[#allocation8] sm:$0xff] (!%p837_p5) }
  0xc6   : > { %v575_v8 = vld [vmem:[#allocation8 + $0x98] sm:$0xff] (!%p837_p5)  ;;  %v558_v11 = vld [vmem:[#allocation8 + $0x10] sm:$0xff] (!%p837_p5)  ;;  %v577_v14 = vld [vmem:[#allocation8 + $0xa8] sm:$0xff] (!%p837_p5) }
  0xc7   : > { %919 = vmatpush1.bf16.msra.mxu0 %v918_v46  ;;  %1010 = vmatpush1.bf16.msra.mxu1 %v918_v46  ;;  %v578_v20 = vld [vmem:[#allocation8 + $0xb0] sm:$0xff] (!%p837_p5)  ;;  %v579_v21 = vld [vmem:[#allocation8 + $0xb8] sm:$0xff] (!%p837_p5)  ;;  %v580_v27 = vld [vmem:[#allocation8 + $0xc0] sm:$0xff] (!%p837_p5) }
  0xc8   : > { %921 = vmatprep.subr.bf16.mxu0 %v920_v47  ;;  %995 = vmatprep.subr.bf16.mxu1 %v920_v47  ;;  %v563_v26 = vld [vmem:[#allocation8 + $0x38] sm:$0xff] (!%p837_p5)  ;;  %v581_v28 = vld [vmem:[#allocation8 + $0xc8] sm:$0xff] (!%p837_p5) }
  0xcb   : > { %923 = vmatpush1.bf16.msra.mxu0 %v922_v52  ;;  %1011 = vmatpush1.bf16.msra.mxu1 %v922_v52 }
  0xcc   : > { %925 = vmatprep.subr.bf16.mxu0 %v924_v53  ;;  %996 = vmatprep.subr.bf16.mxu1 %v924_v53  ;;  %v333_v53 = vld [vmem:[#allocation2 + $0x10] sm:$0xff] }
  0xcf   : > { %927 = vmatpush1.bf16.msra.mxu0 %v926_v58  ;;  %1012 = vmatpush1.bf16.msra.mxu1 %v926_v58 }
  0xd0   : > { %929 = vmatprep.subr.bf16.mxu0 %v928_v59  ;;  %997 = vmatprep.subr.bf16.mxu1 %v928_v59 }
  0xd3   : > { %931 = vmatpush1.bf16.msra.mxu0 %v930_v0  ;;  %1013 = vmatpush1.bf16.msra.mxu1 %v930_v0 }
  0xd4   : > { %933 = vmatprep.subr.bf16.mxu0 %v932_v1  ;;  %998 = vmatprep.subr.bf16.mxu1 %v932_v1  ;;  %v572_v1 = vld [vmem:[#allocation8 + $0x80] sm:$0xff] (!%p837_p5) }
  0xd5   : > { %v956_v5 = vpack.c.bf16 (!%p837_p5), %v573_v2, %v572_v1 }
  0xd7   : > { %935 = vmatpush1.bf16.msra.mxu0 %v934_v6  ;;  %1014 = vmatpush1.bf16.msra.mxu1 %v934_v6  ;;  %v557_v6 = vld [vmem:[#allocation8 + $0x8] sm:$0xff] (!%p837_p5) }
  0xd8   : > { %937 = vmatprep.subr.bf16.mxu0 %v936_v7  ;;  %999 = vmatprep.subr.bf16.mxu1 %v936_v7  ;;  %v574_v7 = vld [vmem:[#allocation8 + $0x90] sm:$0xff] (!%p837_p5)  ;;  %v958_v9 = vpack.c.bf16 (!%p837_p5), %v557_v6, %v556_v3 }
  0xd9   : > { %v960_v10 = vpack.c.bf16 (!%p837_p5), %v575_v8, %v574_v7 }
  0xdb   : > { %939 = vmatpush1.bf16.msra.mxu0 %v938_v12  ;;  %1015 = vmatpush1.bf16.msra.mxu1 %v938_v12  ;;  %v559_v12 = vld [vmem:[#allocation8 + $0x18] sm:$0xff] (!%p837_p5) }
  0xdc   : > { %941 = vmatprep.subr.bf16.mxu0 %v940_v13  ;;  %1000 = vmatprep.subr.bf16.mxu1 %v940_v13  ;;  %v576_v13 = vld [vmem:[#allocation8 + $0xa0] sm:$0xff] (!%p837_p5)  ;;  %v962_v15 = vpack.c.bf16 (!%p837_p5), %v559_v12, %v558_v11 }
  0xdd   : > { %v964_v17 = vpack.c.bf16 (!%p837_p5), %v577_v14, %v576_v13 }
  0xdf   : > { %943 = vmatpush1.bf16.msra.mxu0 %v942_v18  ;;  %1016 = vmatpush1.bf16.msra.mxu1 %v942_v18  ;;  %v560_v18 = vld [vmem:[#allocation8 + $0x20] sm:$0xff] (!%p837_p5) }
  0xe0   : > { %945 = vmatprep.subr.bf16.mxu0 %v944_v19  ;;  %1001 = vmatprep.subr.bf16.mxu1 %v944_v19  ;;  %v561_v19 = vld [vmem:[#allocation8 + $0x28] sm:$0xff] (!%p837_p5) }
  0xe1   : > { %v966_v22 = vpack.c.bf16 (!%p837_p5), %v561_v19, %v560_v18  ;;  %v838_v18 = vld [vmem:[%s2001_s17] ss:$0 sm:$0xff] (!%p837_p5) }
  0xe3   : > { %947 = vmatpush1.bf16.msra.mxu0 %v946_v24  ;;  %1017 = vmatpush1.bf16.msra.mxu1 %v946_v24  ;;  %v968_v24 = vpack.c.bf16 (!%p837_p5), %v579_v21, %v578_v20 }
  0xe4   : > { %949 = vmatprep.subr.bf16.mxu0 %v948_v25  ;;  %1002 = vmatprep.subr.bf16.mxu1 %v948_v25  ;;  %v562_v25 = vld [vmem:[#allocation8 + $0x30] sm:$0xff] (!%p837_p5) }
  0xe5   : > { %v970_v32 = vpack.c.bf16 (!%p837_p5), %v563_v26, %v562_v25 }
  0xe7   : > { %951 = vmatpush1.bf16.msra.mxu0 %v950_v30  ;;  %1018 = vmatpush1.bf16.msra.mxu1 %v950_v30  ;;  %v528_v30 = vld [vmem:[%s2000_s13] sm:$0x3] (!%p837_p5) }
  0xe8   : > { %953 = vmatprep.subr.bf16.mxu0 %v952_v31  ;;  %1003 = vmatprep.subr.bf16.mxu1 %v952_v31  ;;  %v537_v33 = vrot.slane (!%p837_p5), %v528_v30, %v536_v23 }
  0xeb   : > { %955 = vmatpush1.bf16.msra.mxu0 %v954_v34  ;;  %1019 = vmatpush1.bf16.msra.mxu1 %v954_v34  ;;  %v972_v34 = vpack.c.bf16 (!%p837_p5), %v581_v28, %v580_v27 }
  0xec   : > { %957 = vmatprep.subr.bf16.mxu0 (!%p837_p5), %v956_v5  ;;  %1020 = vmatprep.subr.bf16.mxu1 (!%p837_p5), %v956_v5 }
  0xee   : > { %476 = vmatmul.mubr.f32.vlgmr.msra.gmra.mrb[0].mxu0 %v339_v35  ;;  %488 = vmatmul.mubr.f32.vlgmr.msra.gmra.mrb[0].mxu1 %v343_v36  ;;  %v564_v35 = vld [vmem:[#allocation8 + $0x40] sm:$0xff] (!%p837_p5)  ;;  %v565_v36 = vld [vmem:[#allocation8 + $0x48] sm:$0xff] (!%p837_p5) }
  0xef   : > { %481 = vmatprep.mubr.f32.mxu0 %v342_v37  ;;  %493 = vmatprep.mubr.f32.mxu1 %v346_v38  ;;  %v582_v37 = vld [vmem:[#allocation8 + $0xd0] sm:$0xff] (!%p837_p5)  ;;  %v583_v38 = vld [vmem:[#allocation8 + $0xd8] sm:$0xff] (!%p837_p5) }
  0xf0   : > { %959 = vmatpush3.bf16.msra.mxu0 (!%p837_p5), %v958_v9  ;;  %1028 = vmatpush3.bf16.msra.mxu1 (!%p837_p5), %v958_v9 }
  0xf1   : > { %961 = vmatprep.subr.bf16.mxu0 (!%p837_p5), %v960_v10  ;;  %1021 = vmatprep.subr.bf16.mxu1 (!%p837_p5), %v960_v10 }
  0xf2   : > { %482 = vmatmul.mubr.f32.gmra.mrb[2].mxu0 %v341_v39  ;;  %494 = vmatmul.mubr.f32.gmra.mrb[2].mxu1 %v345_v40 }
  0xf4   : > { %963 = vmatpush3.bf16.msra.mxu0 (!%p837_p5), %v962_v15  ;;  %1029 = vmatpush3.bf16.msra.mxu1 (!%p837_p5), %v962_v15 }
  0xf5   : > { %965 = vmatprep.subr.bf16.mxu0 (!%p837_p5), %v964_v17  ;;  %1022 = vmatprep.subr.bf16.mxu1 (!%p837_p5), %v964_v17 }
  0xf8   : > { %967 = vmatpush3.bf16.msra.mxu0 (!%p837_p5), %v966_v22  ;;  %1030 = vmatpush3.bf16.msra.mxu1 (!%p837_p5), %v966_v22 }
  0xf9   : > { %969 = vmatprep.subr.bf16.mxu0 (!%p837_p5), %v968_v24  ;;  %1023 = vmatprep.subr.bf16.mxu1 (!%p837_p5), %v968_v24 }
  0xfc   : > { %971 = vmatpush3.bf16.msra.mxu0 (!%p837_p5), %v970_v32  ;;  %1031 = vmatpush3.bf16.msra.mxu1 (!%p837_p5), %v970_v32 }
  0xfd   : > { %973 = vmatprep.subr.bf16.mxu0 (!%p837_p5), %v972_v34  ;;  %1024 = vmatprep.subr.bf16.mxu1 (!%p837_p5), %v972_v34 }
 0x1c1   : > { %v477_v45 = vpop.f32.mrb[0].mxu0  ;;  %v489_v46 = vpop.f32.mrb[0].mxu1 }
 0x1c2   : > { %v500_v47 = vadd.f32 %v477_v45, %v331_v41  ;;  %v504_v48 = vadd.f32 %v489_v46, %v335_v42  ;;  %v479_v49 = vpop.f32.mrb[1].mxu0  ;;  %v491_v50 = vpop.f32.mrb[1].mxu1  ;;  %v974_v41 = vpack.c.bf16 (!%p837_p5), %v565_v36, %v564_v35  ;;  %v566_v45 = vld [vmem:[#allocation8 + $0x50] sm:$0xff] (!%p837_p5)  ;;  %v567_v46 = vld [vmem:[#allocation8 + $0x58] sm:$0xff] (!%p837_p5) }
 0x1c3   : > { %v501_v51 = vadd.f32 %v479_v49, %v332_v43  ;;  %v505_v52 = vadd.f32 %v491_v50, %v336_v44  ;;  %519 = sbr.rel (%p837_p5) target bundleno = 689 (0x2b1), region = 60  ;;  %v976_v44 = vpack.c.bf16 (!%p837_p5), %v583_v38, %v582_v37  ;;  %v532_v49 = vsub.s32 (!%p837_p5), 0, %v531_v16 }
 0x1c4   : > { %508 = vst [vmem:[#allocation2] sm:$0xff] %v500_v47  ;;  %512 = vst [vmem:[#allocation2 + $0x20] sm:$0xff] %v504_v48  ;;  %v584_v47 = vld [vmem:[#allocation8 + $0xe0] sm:$0xff] (!%p837_p5)  ;;  %v585_v48 = vld [vmem:[#allocation8 + $0xe8] sm:$0xff] (!%p837_p5)  ;;  %975 = vmatpush3.bf16.msra.mxu0 (!%p837_p5), %v974_v41  ;;  %1032 = vmatpush3.bf16.msra.mxu1 (!%p837_p5), %v974_v41  ;;  %v978_v50 = vpack.c.bf16 (!%p837_p5), %v567_v46, %v566_v45 }
 0x1c5   : > { %509 = vst [vmem:[#allocation2 + $0x8] sm:$0xff] %v501_v51  ;;  %513 = vst [vmem:[#allocation2 + $0x28] sm:$0xff] %v505_v52  ;;  %v483_v57 = vpop.f32.mrb[2].mxu0  ;;  %v495_v58 = vpop.f32.mrb[2].mxu1  ;;  %977 = vmatprep.subr.bf16.mxu0 (!%p837_p5), %v976_v44  ;;  %1025 = vmatprep.subr.bf16.mxu1 (!%p837_p5), %v976_v44  ;;  %v980_v51 = vpack.c.bf16 (!%p837_p5), %v585_v48, %v584_v47  ;;  %v568_v52 = vld [vmem:[#allocation8 + $0x60] sm:$0xff] (!%p837_p5) }
 0x1c6   : > { %v502_v59 = vadd.f32 %v483_v57, %v333_v53  ;;  %v506_v60 = vadd.f32 %v495_v58, %v337_v54  ;;  %v485_v61 = vpop.f32.mrb[3].mxu0  ;;  %v497_v62 = vpop.f32.mrb[3].mxu1  ;;  %v569_v53 = vld [vmem:[#allocation8 + $0x68] sm:$0xff] (!%p837_p5)  ;;  %v586_v54 = vld [vmem:[#allocation8 + $0xf0] sm:$0xff] (!%p837_p5) }
 0x1c7   : > { %v503_v63 = vadd.f32 %v485_v61, %v334_v55  ;;  %v507_v0 = vadd.f32 %v497_v62, %v338_v56  ;;  %v587_v55 = vld [vmem:[#allocation8 + $0xf8] sm:$0xff] (!%p837_p5)  ;;  %v533_v56 = vrot.slane (!%p837_p5), %v528_v30, %v532_v49  ;;  %v982_v57 = vpack.c.bf16 (!%p837_p5), %v569_v53, %v568_v52  ;;  %v570_v58 = vld [vmem:[#allocation8 + $0x70] sm:$0xff] (!%p837_p5) }
 0x1c8   : > { %510 = vst [vmem:[#allocation2 + $0x10] sm:$0xff] %v502_v59  ;;  %514 = vst [vmem:[#allocation2 + $0x30] sm:$0xff] %v506_v60  ;;  %979 = vmatpush3.bf16.msra.mxu0 (!%p837_p5), %v978_v50  ;;  %1033 = vmatpush3.bf16.msra.mxu1 (!%p837_p5), %v978_v50  ;;  %v984_v61 = vpack.c.bf16 (!%p837_p5), %v587_v55, %v586_v54  ;;  %v571_v62 = vld [vmem:[#allocation8 + $0x78] sm:$0xff] (!%p837_p5) }
 0x1c9   : > { %511 = vst [vmem:[#allocation2 + $0x18] sm:$0xff] %v503_v63  ;;  %515 = vst [vmem:[#allocation2 + $0x38] sm:$0xff] %v507_v0  ;;  %981 = vmatprep.subr.bf16.mxu0 (!%p837_p5), %v980_v51  ;;  %1026 = vmatprep.subr.bf16.mxu1 (!%p837_p5), %v980_v51  ;;  %v986_v3 = vpack.c.bf16 (!%p837_p5), %v571_v62, %v570_v58 }
 0x1cb   : > { %v520_v59 = vld [vmem:[#allocation2] sm:$0xff] }
 0x1cc   : > { %v521_v29 = vld [vmem:[#allocation2 + $0x8] sm:$0xff]  ;;  %v524_v60 = vld [vmem:[#allocation2 + $0x20] sm:$0xff]  ;;  %v540_v1 = vadd.f32 %v533_v56, %v520_v59  ;;  %983 = vmatpush3.bf16.msra.mxu0 %v982_v57  ;;  %1034 = vmatpush3.bf16.msra.mxu1 %v982_v57 }
 0x1cd   : > { %v525_v31 = vld [vmem:[#allocation2 + $0x28] sm:$0xff]  ;;  %v541_v39 = vadd.f32 %v537_v33, %v521_v29  ;;  %v544_v2 = vadd.f32 %v533_v56, %v524_v60  ;;  %985 = vmatprep.subr.bf16.mxu0 %v984_v61  ;;  %1027 = vmatprep.subr.bf16.mxu1 %v984_v61 }
 0x1ce   : > { %v545_v40 = vadd.f32 %v537_v33, %v525_v31  ;;  %v548_v8 = vmax.f32 %v540_v1, 0.0 }
 0x1cf   : > { %v549_v42 = vmax.f32 %v541_v39, 0.0  ;;  %v522_v6 = vld [vmem:[#allocation2 + $0x10] sm:$0xff]  ;;  %v552_v9 = vmax.f32 %v544_v2, 0.0 }
 0x1d0   : > { %v553_v43 = vmax.f32 %v545_v40, 0.0  ;;  %v523_v63 = vld [vmem:[#allocation2 + $0x18] sm:$0xff]  ;;  %v526_v7 = vld [vmem:[#allocation2 + $0x30] sm:$0xff]  ;;  %v542_v10 = vadd.f32 %v533_v56, %v522_v6  ;;  %987 = vmatpush3.bf16.msra.mxu0 %v986_v3  ;;  %1035 = vmatpush3.bf16.msra.mxu1 %v986_v3 }
 0x1d1   : > { %659 = vmatprep.mubr.f32.mxu0 %v549_v42  ;;  %v527_v0 = vld [vmem:[#allocation2 + $0x38] sm:$0xff]  ;;  %v543_v4 = vadd.f32 %v537_v33, %v523_v63  ;;  %v546_v11 = vadd.f32 %v533_v56, %v526_v7 }
 0x1d2   : > { %669 = vmatprep.mubr.f32.mxu1 %v553_v43  ;;  %v547_v5 = vadd.f32 %v537_v33, %v527_v0  ;;  %v550_v14 = vmax.f32 %v542_v10, 0.0 }
 0x1d3   : > { %v551_v12 = vmax.f32 %v543_v4, 0.0  ;;  %660 = vmatmul.mubr.f32.vlgmr.msra.gmra.mrb[0].mxu0 %v548_v8  ;;  %670 = vmatmul.mubr.f32.vlgmr.msra.gmra.mrb[0].mxu1 %v552_v9  ;;  %v554_v15 = vmax.f32 %v546_v11, 0.0 }
 0x1d4   : > { %v555_v13 = vmax.f32 %v547_v5, 0.0 }
 0x1d5   : > { %664 = vmatprep.mubr.f32.mxu0 %v551_v12 }
 0x1d6   : > { %674 = vmatprep.mubr.f32.mxu1 %v555_v13 }
 0x1d7   : > { %665 = vmatmul.mubr.f32.gmra.mrb[2].mxu0 %v550_v14  ;;  %675 = vmatmul.mubr.f32.gmra.mrb[2].mxu1 %v554_v15 }
 0x2a6   : > { %v880_v16 = vpop.f32.mrb[0].mxu0  ;;  %v886_v17 = vpop.f32.mrb[0].mxu1 }
 0x2a7   : > { %v881_v19 = vpop.f32.mrb[1].mxu0  ;;  %v887_v20 = vpop.f32.mrb[1].mxu1 }
 0x2a8   : > { %v882_v21 = vadd.f32 %v881_v19, %v880_v16  ;;  %v888_v22 = vadd.f32 %v887_v20, %v886_v17 }
 0x2aa   : > { %v662_v23 = vadd.f32 %v882_v21, %v838_v18  ;;  %v672_v24 = vadd.f32 %v888_v22, %v838_v18  ;;  %v883_v25 = vpop.f32.mrb[2].mxu0  ;;  %v889_v26 = vpop.f32.mrb[2].mxu1 }
 0x2ab   : > { %v884_v27 = vpop.f32.mrb[3].mxu0  ;;  %v890_v28 = vpop.f32.mrb[3].mxu1 }
 0x2ac   : > { %680 = vst [vmem:[%s1764_s19] sm:$0xff] %v662_v23  ;;  %682 = vst [vmem:[%s1764_s19 + $0x10] sm:$0xff] %v672_v24  ;;  %v885_v29 = vadd.f32 %v884_v27, %v883_v25  ;;  %v891_v30 = vadd.f32 %v890_v28, %v889_v26 }
 0x2ae   : > { %v667_v31 = vadd.f32 %v885_v29, %v838_v18  ;;  %v677_v32 = vadd.f32 %v891_v30, %v838_v18 }
 0x2b0   : > { %681 = vst [vmem:[%s1764_s19 + $0x8] sm:$0xff] %v667_v31  ;;  %683 = vst [vmem:[%s1764_s19 + $0x18] sm:$0xff] %v677_v32 }
 0x2b1 PF: > { %s2002_s8 = sld [smem:[#allocation17_spill]]  ;;  %s2004_s21 = sld [smem:[#allocation20_spill]] }
 0x2b2   : > { %s2005_s10 = sld [smem:[#allocation27_spill]]  ;;  %s698_s15 = sshll.u32 %s1764_s19, 4  ;;  %s1857_s15 = int_to_ptr.vmem [resolvable:$true] %s698_s15 }
 0x2b3   : > { %s1861_s9 = scalar_lea.sflag [#allocation5], %s312_s24  ;;  %s1274_s27 = scalar_lea.vmem %s1857_s15, 512 }
 0x2b4   : > { %p1275_p2 = scmp.ne.s32.totalorder %s1857_s15, %s1274_s27  ;;  %s1439_s2 = smov [#allocation9]  }
 0x2b5   : > { %s1278_s13 = sshll.u32 %s1439_s2, 4  ;;  %s1279_s13 = int_to_ptr.vmem [resolvable:$false] %s1278_s13 }
 0x2b6   : > { %s1280_s28 = scalar_lea.vmem %s1279_s13, 1024  ;;  %p1281_p4 = scmp.lt.s32.totalorder %s1857_s15, %s1279_s13 }
 0x2b7   : > { %s847_s4 = sshll.u32 %s2002_s8, 9  ;;  %p2006_p10 = scmp.ne.s32.totalorder %s2004_s21, 0 }
 0x2b8   : > { %s1854_s3 = scalar_lea.hbm %s2005_s10, %s847_s4  ;;  %p1282_p8 = scmp.lt.s32.totalorder %s1280_s28, %s1274_s27 }
 0x2b9   : > { %p1276_p7 = pnand %p1275_p2, %p2006_p10 }
 0x2ba   : > { %p1283_p12 = por %p1282_p8, %p1281_p4 }
 0x2bb   : > { %p1277_p11 = pneg %p1276_p7 }
 0x2bd   : > { %p1284_p13 = pnand %p1283_p12, %p1277_p11 }
 0x2bf   : > { %1287 = shalt.err (!%p1284_p13)
}
 0x2c0   : > { %s1288_s24 = scalar_lea.hbm %s1854_s3, 512  ;;  %s1292_s17 = scalar_lea.hbm %s2005_s10, 1024 }
 0x2c1   : > { %p1289_p6 = scmp.ne.s32.totalorder %s1854_s3, %s1288_s24  ;;  %p1293_p3 = scmp.lt.u32.totalorder %s1854_s3, %s2005_s10 }
 0x2c2   : > { %p1294_p9 = scmp.lt.u32.totalorder %s1292_s17, %s1288_s24  ;;  %p1296_p2 = scmp.lt.u32.totalorder %s1288_s24, %s1854_s3 }
 0x2c3   : > { %p1290_p0 = pnand %p1289_p6, %p2006_p10 }
 0x2c4   : > { %p1295_p5 = por %p1294_p9, %p1293_p3 }
 0x2c5   : > { %p1291_p1 = pneg %p1290_p0 }
 0x2c6   : > { %p1297_p7 = por %p1296_p2, %p1295_p5 }
 0x2c8   : > { %p1298_p11 = pnand %p1297_p7, %p1291_p1 }
 0x2ca   : > { %1301 = shalt.err (!%p1298_p11)
}
 0x2cb   : > { %s1440_s4 = smov 128   ;;  %s1441_s14 = smov 8  }
 0x2cc   : > { %1044 = dma.vmem_to_hbm [thread:$0]  (%p2006_p10), %s1857_s15, 512, %s1854_s3, %s1861_s9, %s1440_s4, %s1440_s4, %s1441_s14  }
 0x2cd PF: > { %s2007_s18 = sld [smem:[#allocation14_spill]]  ;;  %s2008_s27 = sld [smem:[#allocation21_spill]] }
 0x2ce   : > { %p1064_p4 = scmp.ge.s32.totalorder %s1428_s6, 2 }
 0x2d3   : > { %s713_s2 = sand.u32 1, %s2007_s18   ;;  %p2009_p8 = scmp.ne.s32.totalorder %s2008_s27, 0 }
 0x2d4   : > { %s714_s13 = scalar_lea.sflag [#allocation5], %s713_s2 }
 0x2d5   : > { %p1058_p12 = pnand %p1064_p4, %p2009_p8 }
 0x2d7   : > { %1371 = dma.done.wait (!%p1058_p12), %s714_s13, 512  }
 0x2d8   : > { %1373 = vsyncadd (!%p1058_p12), %s714_s13, 4294966784  ;;  %s24_s6 = sadd.s32 1, %s1428_s6   ;;  %s2011_s18 = sld [smem:[#allocation15_spill]] }
 0x2d9   : > { %p1890_p13 = scmp.ge.s32.totalorder %s24_s6, 6   ;;  %s2012_s3 = sld [smem:[#allocation22_spill]] }
 0x2da   : > { %s2013_s15 = sld [smem:[#allocation23_spill]]  ;;  %s2015_s19 = smov %s1384_s20 }
 0x2db   : > { %s2016_s20 = smov %s1632_s5  ;;  %s2017_s21 = smov %s1392_s22 }
 0x2dc   : > { %s2018_s22 = smov %s1396_s23  ;;  %s2019_s23 = smov %s1690_s7 }
 0x2dd   : > { %s2020_s24 = smov %s1404_s25  ;;  %s2021_s25 = smov %s1408_s26 }
 0x2de   : > { %s2022_s26 = smov %s1635_s12  ;;  %s2023_s27 = smov %s1420_s29 }
 0x2df   : > { %s2024_s28 = smov %s1424_s30  ;;  %s2025_s29 = smov %s2012_s3 }
 0x2e0   : > { %s2026_s30 = smov %s2013_s15  ;;  %23 = sbr.rel (!%p1890_p13) target bundleno = 17 (0x11), region = 110 }
 0x2e7   :  { %719 = vsyncpa [#allocation4], 1 }
 0x2e8   :  { %721 = vsyncpa [#allocation4 + $0x1], 1 }
 0x2e9   :  { %722 = vsyncpa [#allocation7], 1 }
 0x2ea   :  { %724 = vsyncpa [#allocation7 + $0x1], 1 }
 0x2eb   :  { %725 = vsyncpa [#allocation5], 1 }
 0x2ec   :  { %727 = vsyncpa [#allocation5 + $0x1], 1 }

</bundles_post_ra>
